<compile_context>
chip_gen: v7x
topology: tpu7x:2x2x1
jax: 0.10.0
libtpu: 0.0.40
codegen_flags: <defaults>
</compile_context>

<pallas_src>
import functools

import jax
import jax.numpy as jnp
from jax.experimental import pallas as pl
from jax.experimental.pallas import tpu as pltpu


def _maxmin_mil_kernel(bag_ref, x_ref, w1_ref, b1_ref, w2r_ref, b2_ref, out_ref,
                       *, n_valid, k_top, k_bot):
    """One bag per grid step.

    bag_ref: (B,)          i32   bag labels (scalar-prefetched into SMEM)
    x_ref:   (1, N_pad, D) bf16  instances (rows >= n_valid are zero padding)
    w1_ref:  (D, H)        bf16  first Linear weight
    b1_ref:  (1, H)        f32   first Linear bias
    w2r_ref: (1, H)        f32   second Linear weight, pre-transposed
    b2_ref:  (1, 1)        f32   second Linear bias
    out_ref: (1, 3, N_pad) f32   row 0 = logits, row 1 = labels, row 2 = mask
    """
    n_pad = out_ref.shape[-1]

    # ---- instance classifier: Linear(D,H) -> ReLU -> Linear(H,1) ------------
    # MXU matmul on bf16 operands, f32 accumulate.
    h = jnp.dot(x_ref[0], w1_ref[...], preferred_element_type=jnp.float32)
    h = jnp.maximum(h + b1_ref[...], 0.0)                        # (N_pad, H) f32
    # width-1 output matmul replaced by VPU mul + lane reduce.
    logits_col = (jnp.sum(h * w2r_ref[...], axis=-1, keepdims=True)
                  + b2_ref[...])                                 # (N_pad, 1)
    pred_row = jnp.transpose(logits_col)                         # (1, N_pad)

    out_ref[0, 0:1, :] = pred_row                                # predictions

    bag = bag_ref[pl.program_id(0)]

    # ---- positive bag: top-k / bottom-k proxy labels via pairwise ranks -----
    # TODO(synk): for real-sized bags (N in the thousands) row-tile this
    # (N_pad, N_pad) compare to respect v7x's 64 MiB VMEM.
    @pl.when(bag != 0)
    def _():
        # rows index j (counting axis), columns index i (instance axis).
        row_j = jax.lax.broadcasted_iota(jnp.int32, (n_pad, n_pad), 0)
        col_i = jax.lax.broadcasted_iota(jnp.int32, (n_pad, n_pad), 1)
        valid_j = row_j < n_valid                                # ignore padded rows
        p_j = logits_col                                         # value of j (lanes bcast)
        p_i = pred_row                                           # value of i (sublanes bcast)
        tie_lower = jnp.logical_and(p_j == p_i, row_j < col_i)   # deterministic tie-break

        # rank among largest = #valid j strictly ahead of i in descending order
        ahead_top = jnp.logical_and(valid_j,
                                    jnp.logical_or(p_j > p_i, tie_lower))
        rank_top = jnp.sum(ahead_top.astype(jnp.int32), axis=0, keepdims=True)
        top_sel = rank_top < k_top                               # (1, N_pad)

        ones = jnp.ones_like(pred_row)
        zeros = jnp.zeros_like(pred_row)
        labels_row = jnp.where(top_sel, ones, zeros)
        if k_bot > 0:
            # rank among smallest; bottom-k overrides the label to 0 (same
            # write order as the torch code: topk first, bottomk second).
            ahead_bot = jnp.logical_and(valid_j,
                                        jnp.logical_or(p_j < p_i, tie_lower))
            rank_bot = jnp.sum(ahead_bot.astype(jnp.int32), axis=0, keepdims=True)
            bot_sel = rank_bot < k_bot
            labels_row = jnp.where(bot_sel, zeros, labels_row)
            mask_row = jnp.where(jnp.logical_or(top_sel, bot_sel), ones, zeros)
        else:
            mask_row = labels_row
        out_ref[0, 1:2, :] = labels_row
        out_ref[0, 2:3, :] = mask_row

    # ---- negative bag: labels all 0, every instance masked in ---------------
    @pl.when(bag == 0)
    def _():
        out_ref[0, 1:2, :] = jnp.zeros_like(pred_row)
        out_ref[0, 2:3, :] = jnp.ones_like(pred_row)


def maxmin_mil_forward(instances, bag_labels, params, *, alpha, beta):
    """Batched MaxMinMIL forward.

    instances:  (B, N, D) float -- B bags of N instances each
    bag_labels: (B,)      int
    Returns (preds, labels, mask), each (B, N, 1) float32.  For B == 1 this is
    exactly the unsqueeze(0) shape returned by the torch module's forward().
    """
    b, n, d = instances.shape
    h_dim = params["w1"].shape[1]
    n_pad = ((n + 127) // 128) * 128          # instances live on the lane axis
    k_top = int(alpha * n)                     # same truncation as the torch code
    k_bot = int(beta * n)

    # bf16 MXU operands; zero-pad instance rows up to the lane width.
    x = jnp.zeros((b, n_pad, d), jnp.bfloat16)
    x = x.at[:, :n, :].set(instances.astype(jnp.bfloat16))
    w1 = params["w1"].astype(jnp.bfloat16)                      # (D, H)
    b1 = params["b1"].astype(jnp.float32)                       # (1, H)
    w2r = jnp.transpose(params["w2"]).astype(jnp.float32)       # (1, H)
    b2 = params["b2"].astype(jnp.float32)                       # (1, 1)
    bags = bag_labels.reshape(b).astype(jnp.int32)

    kernel = functools.partial(_maxmin_mil_kernel,
                               n_valid=n, k_top=k_top, k_bot=k_bot)
    out = pl.pallas_call(
        kernel,
        out_shape=jax.ShapeDtypeStruct((b, 3, n_pad), jnp.float32),
        grid_spec=pltpu.PrefetchScalarGridSpec(
            num_scalar_prefetch=1,                               # bag labels -> SMEM
            grid=(b,),
            in_specs=[
                pl.BlockSpec((1, n_pad, d), lambda i, bags: (i, 0, 0)),   # x
                pl.BlockSpec((d, h_dim), lambda i, bags: (0, 0)),         # w1 (resident)
                pl.BlockSpec((1, h_dim), lambda i, bags: (0, 0)),         # b1
                pl.BlockSpec((1, h_dim), lambda i, bags: (0, 0)),         # w2 row
                pl.BlockSpec((1, 1), lambda i, bags: (0, 0)),             # b2
            ],
            out_specs=pl.BlockSpec((1, 3, n_pad), lambda i, bags: (i, 0, 0)),
        ),
        compiler_params=pltpu.CompilerParams(
            dimension_semantics=("parallel",)),                  # v7x: bags across both TCs
    )(bags, x, w1, b1, w2r, b2)

    preds = out[:, 0, :n, None]                                  # (B, N, 1)
    labels = out[:, 1, :n, None]
    mask = out[:, 2, :n, None]
    return preds, labels, mask


def init_params(key, d, hdim):
    k1, k2, k3, k4 = jax.random.split(key, 4)
    return {
        "w1": 0.1 * jax.random.normal(k1, (d, hdim), jnp.float32),
        "b1": 0.1 * jax.random.normal(k2, (1, hdim), jnp.float32),
        "w2": 0.1 * jax.random.normal(k3, (hdim, 1), jnp.float32),
        "b2": 0.1 * jax.random.normal(k4, (1, 1), jnp.float32),
    }


if __name__ == "__main__":
    # small shapes: 2 bags of N=8 instances, D=32 features, H=32 hidden units
    B, N, D, H = 2, 8, 32, 32
    ALPHA, BETA = 0.5, 0.25          # -> k_top = 4, k_bot = 2

    key = jax.random.PRNGKey(0)
    k_x, k_p = jax.random.split(key)
    instances = jax.random.normal(k_x, (B, N, D), jnp.float32)
    params = init_params(k_p, D, H)
    bag_labels = jnp.array([1, 0], jnp.int32)     # bag 0 positive, bag 1 negative

    preds, labels, mask = maxmin_mil_forward(
        instances, bag_labels, params, alpha=ALPHA, beta=BETA)
    jax.block_until_ready((preds, labels, mask))

    # sanity checks mirroring MaxMinMIL semantics
    k_top, k_bot = int(ALPHA * N), int(BETA * N)
    assert preds.shape == labels.shape == mask.shape == (B, N, 1)
    # positive bag: top-k labelled 1, top-k + bottom-k masked in
    assert float(labels[0].sum()) == float(k_top)
    assert float(mask[0].sum()) == float(k_top + k_bot)
    # negative bag: all labels 0, all instances masked in
    assert float(labels[1].sum()) == 0.0
    assert float(mask[1].sum()) == float(N)

    # TODO(synk): self.loss() (BCEWithLogitsLoss) is not part of forward(); not implemented here.
    print("KERNEL_OK")
</pallas_src>

<mosaic_0001>
module attributes {stable_mosaic.version = 11 : i64} {
  func.func @_maxmin_mil_kernel(%arg0: i32, %arg1: memref<2xi32, #tpu.memory_space<smem>>, %arg2: memref<1x128x32xbf16, #tpu.memory_space<vmem>>, %arg3: memref<32x32xbf16, #tpu.memory_space<vmem>>, %arg4: memref<1x32xf32, #tpu.memory_space<vmem>>, %arg5: memref<1x32xf32, #tpu.memory_space<vmem>>, %arg6: memref<1x1xf32, #tpu.memory_space<vmem>>, %arg7: memref<1x3x128xf32, #tpu.memory_space<vmem>>) attributes {dimension_semantics = [#tpu.dimension_semantics<parallel>], iteration_bounds = array<i64: 2>, scalar_prefetch = 1 : i64, scratch_operands = 0 : i64, tpu.core_type = #tpu.core_type<tc>, window_params = [{transform_indices = @transform_0, window_bounds = array<i64: 1, 128, 32>}, {pipeline_mode = #tpu.pipeline_mode<synchronous>, transform_indices = @transform_1, window_bounds = array<i64: 32, 32>}, {pipeline_mode = #tpu.pipeline_mode<synchronous>, transform_indices = @transform_2, window_bounds = array<i64: 1, 32>}, {pipeline_mode = #tpu.pipeline_mode<synchronous>, transform_indices = @transform_3, window_bounds = array<i64: 1, 32>}, {pipeline_mode = #tpu.pipeline_mode<synchronous>, transform_indices = @transform_4, window_bounds = array<i64: 1, 1>}, {transform_indices = @transform_5, window_bounds = array<i64: 1, 3, 128>}]} {
    %c0 = arith.constant 0 : index
    %c0_0 = arith.constant 0 : index
    %c0_1 = arith.constant 0 : index
    %0 = vector.load %arg2[%c0, %c0_0, %c0_1] : memref<1x128x32xbf16, #tpu.memory_space<vmem>>, vector<1x128x32xbf16>
    %1 = vector.shape_cast %0 : vector<1x128x32xbf16> to vector<128x32xbf16>
    %c0_2 = arith.constant 0 : index
    %c0_3 = arith.constant 0 : index
    %2 = vector.load %arg3[%c0_2, %c0_3] : memref<32x32xbf16, #tpu.memory_space<vmem>>, vector<32x32xbf16>
    %cst = arith.constant dense<0.000000e+00> : vector<128x32xf32>
    %3 = tpu.matmul %1, %2, %cst {dimension_numbers = #tpu.dot_dimension_numbers<[1], [0], [0], [1], [0, 0, 1, 1], [], []>} : vector<128x32xbf16>, vector<32x32xbf16>, vector<128x32xf32> -> vector<128x32xf32>
    %c0_4 = arith.constant 0 : index
    %c0_5 = arith.constant 0 : index
    %4 = vector.load %arg4[%c0_4, %c0_5] : memref<1x32xf32, #tpu.memory_space<vmem>>, vector<1x32xf32>
    %5 = vector.broadcast %4 : vector<1x32xf32> to vector<128x32xf32>
    %6 = arith.addf %3, %5 : vector<128x32xf32>
    %cst_6 = arith.constant 0.000000e+00 : f32
    %7 = vector.broadcast %cst_6 : f32 to vector<128x32xf32>
    %8 = arith.maximumf %6, %7 : vector<128x32xf32>
    %c0_7 = arith.constant 0 : index
    %c0_8 = arith.constant 0 : index
    %9 = vector.load %arg5[%c0_7, %c0_8] : memref<1x32xf32, #tpu.memory_space<vmem>>, vector<1x32xf32>
    %10 = vector.broadcast %9 : vector<1x32xf32> to vector<128x32xf32>
    %11 = arith.mulf %8, %10 : vector<128x32xf32>
    %cst_9 = arith.constant dense<0.000000e+00> : vector<128xf32>
    %12 = vector.multi_reduction <add>, %11, %cst_9 [1] : vector<128x32xf32> to vector<128xf32>
    %13 = vector.shape_cast %12 : vector<128xf32> to vector<128x1xf32>
    %c0_10 = arith.constant 0 : index
    %c0_11 = arith.constant 0 : index
    %14 = vector.load %arg6[%c0_10, %c0_11] : memref<1x1xf32, #tpu.memory_space<vmem>>, vector<1x1xf32>
    %15 = vector.broadcast %14 : vector<1x1xf32> to vector<128x1xf32>
    %16 = arith.addf %13, %15 : vector<128x1xf32>
    %17 = tpu.transpose %16, [1, 0] : vector<128x1xf32> -> vector<1x128xf32>
    %c0_12 = arith.constant 0 : index
    %c0_13 = arith.constant 0 : index
    %c0_14 = arith.constant 0 : index
    %18 = vector.load %arg7[%c0_12, %c0_13, %c0_14] : memref<1x3x128xf32, #tpu.memory_space<vmem>>, vector<1x1x128xf32>
    %19 = vector.shape_cast %18 : vector<1x1x128xf32> to vector<1x128xf32>
    %20 = vector.shape_cast %17 : vector<1x128xf32> to vector<1x1x128xf32>
    tpu.vector_store %arg7[%c0_12, %c0_13, %c0_14], %20 {strides = array<i32>} : memref<1x3x128xf32, #tpu.memory_space<vmem>>, vector<1x1x128xf32>,
    %21 = arith.index_cast %arg0 : i32 to index
    %22 = memref.load %arg1[%21] : memref<2xi32, #tpu.memory_space<smem>>
    %c0_i32 = arith.constant 0 : i32
    %23 = arith.cmpi ne, %22, %c0_i32 : i32
    %24 = arith.extui %23 : i1 to i32
    %c0_i32_15 = arith.constant 0 : i32
    %25 = arith.cmpi ne, %24, %c0_i32_15 : i32
    scf.if %25 {
      %29 = tpu.iota {dimensions = array<i32: 0>} : vector<128x128xi32>
      %30 = tpu.iota {dimensions = array<i32: 1>} : vector<128x128xi32>
      %c8_i32 = arith.constant 8 : i32
      %31 = vector.broadcast %c8_i32 : i32 to vector<128x128xi32>
      %32 = arith.cmpi slt, %29, %31 : vector<128x128xi32>
      %33 = vector.broadcast %16 : vector<128x1xf32> to vector<128x128xf32>
      %34 = vector.broadcast %17 : vector<1x128xf32> to vector<128x128xf32>
      %35 = arith.cmpf oeq, %33, %34 : vector<128x128xf32>
      %36 = arith.cmpi slt, %29, %30 : vector<128x128xi32>
      %37 = arith.andi %35, %36 : vector<128x128xi1>
      %38 = vector.broadcast %16 : vector<128x1xf32> to vector<128x128xf32>
      %39 = vector.broadcast %17 : vector<1x128xf32> to vector<128x128xf32>
      %40 = arith.cmpf ogt, %38, %39 : vector<128x128xf32>
      %41 = arith.ori %40, %37 : vector<128x128xi1>
      %42 = arith.andi %32, %41 : vector<128x128xi1>
      %43 = arith.extui %42 : vector<128x128xi1> to vector<128x128xi32>
      %cst_18 = arith.constant dense<0> : vector<128xi32>
      %44 = vector.multi_reduction <add>, %43, %cst_18 [0] : vector<128x128xi32> to vector<128xi32>
      %45 = vector.shape_cast %44 : vector<128xi32> to vector<1x128xi32>
      %c4_i32 = arith.constant 4 : i32
      %46 = vector.broadcast %c4_i32 : i32 to vector<1x128xi32>
      %47 = arith.cmpi slt, %45, %46 : vector<1x128xi32>
      %cst_19 = arith.constant 1.000000e+00 : f32
      %48 = vector.broadcast %cst_19 : f32 to vector<1x128xf32>
      %cst_20 = arith.constant 0.000000e+00 : f32
      %49 = vector.broadcast %cst_20 : f32 to vector<1x128xf32>
      %50 = arith.select %47, %48, %49 : vector<1x128xi1>, vector<1x128xf32>
      %51 = vector.broadcast %16 : vector<128x1xf32> to vector<128x128xf32>
      %52 = vector.broadcast %17 : vector<1x128xf32> to vector<128x128xf32>
      %53 = arith.cmpf olt, %51, %52 : vector<128x128xf32>
      %54 = arith.ori %53, %37 : vector<128x128xi1>
      %55 = arith.andi %32, %54 : vector<128x128xi1>
      %56 = arith.extui %55 : vector<128x128xi1> to vector<128x128xi32>
      %cst_21 = arith.constant dense<0> : vector<128xi32>
      %57 = vector.multi_reduction <add>, %56, %cst_21 [0] : vector<128x128xi32> to vector<128xi32>
      %58 = vector.shape_cast %57 : vector<128xi32> to vector<1x128xi32>
      %c2_i32 = arith.constant 2 : i32
      %59 = vector.broadcast %c2_i32 : i32 to vector<1x128xi32>
      %60 = arith.cmpi slt, %58, %59 : vector<1x128xi32>
      %61 = arith.select %60, %49, %50 : vector<1x128xi1>, vector<1x128xf32>
      %62 = arith.ori %47, %60 : vector<1x128xi1>
      %63 = arith.select %62, %48, %49 : vector<1x128xi1>, vector<1x128xf32>
      %c0_22 = arith.constant 0 : index
      %c1 = arith.constant 1 : index
      %c0_23 = arith.constant 0 : index
      %64 = vector.load %arg7[%c0_22, %c1, %c0_23] : memref<1x3x128xf32, #tpu.memory_space<vmem>>, vector<1x1x128xf32>
      %65 = vector.shape_cast %64 : vector<1x1x128xf32> to vector<1x128xf32>
      %66 = vector.shape_cast %61 : vector<1x128xf32> to vector<1x1x128xf32>
      tpu.vector_store %arg7[%c0_22, %c1, %c0_23], %66 {strides = array<i32>} : memref<1x3x128xf32, #tpu.memory_space<vmem>>, vector<1x1x128xf32>,
      %c0_24 = arith.constant 0 : index
      %c2 = arith.constant 2 : index
      %c0_25 = arith.constant 0 : index
      %67 = vector.load %arg7[%c0_24, %c2, %c0_25] : memref<1x3x128xf32, #tpu.memory_space<vmem>>, vector<1x1x128xf32>
      %68 = vector.shape_cast %67 : vector<1x1x128xf32> to vector<1x128xf32>
      %69 = vector.shape_cast %63 : vector<1x128xf32> to vector<1x1x128xf32>
      tpu.vector_store %arg7[%c0_24, %c2, %c0_25], %69 {strides = array<i32>} : memref<1x3x128xf32, #tpu.memory_space<vmem>>, vector<1x1x128xf32>,
    } else {
    }
    %c0_i32_16 = arith.constant 0 : i32
    %26 = arith.cmpi eq, %22, %c0_i32_16 : i32
    %27 = arith.extui %26 : i1 to i32
    %c0_i32_17 = arith.constant 0 : i32
    %28 = arith.cmpi ne, %27, %c0_i32_17 : i32
    scf.if %28 {
      %cst_18 = arith.constant 0.000000e+00 : f32
      %29 = vector.broadcast %cst_18 : f32 to vector<1x128xf32>
      %c0_19 = arith.constant 0 : index
      %c1 = arith.constant 1 : index
      %c0_20 = arith.constant 0 : index
      %30 = vector.load %arg7[%c0_19, %c1, %c0_20] : memref<1x3x128xf32, #tpu.memory_space<vmem>>, vector<1x1x128xf32>
      %31 = vector.shape_cast %30 : vector<1x1x128xf32> to vector<1x128xf32>
      %32 = vector.shape_cast %29 : vector<1x128xf32> to vector<1x1x128xf32>
      tpu.vector_store %arg7[%c0_19, %c1, %c0_20], %32 {strides = array<i32>} : memref<1x3x128xf32, #tpu.memory_space<vmem>>, vector<1x1x128xf32>,
      %cst_21 = arith.constant 1.000000e+00 : f32
      %33 = vector.broadcast %cst_21 : f32 to vector<1x128xf32>
      %c0_22 = arith.constant 0 : index
      %c2 = arith.constant 2 : index
      %c0_23 = arith.constant 0 : index
      %34 = vector.load %arg7[%c0_22, %c2, %c0_23] : memref<1x3x128xf32, #tpu.memory_space<vmem>>, vector<1x1x128xf32>
      %35 = vector.shape_cast %34 : vector<1x1x128xf32> to vector<1x128xf32>
      %36 = vector.shape_cast %33 : vector<1x128xf32> to vector<1x1x128xf32>
      tpu.vector_store %arg7[%c0_22, %c2, %c0_23], %36 {strides = array<i32>} : memref<1x3x128xf32, #tpu.memory_space<vmem>>, vector<1x1x128xf32>,
    } else {
    }
    return
  }
  func.func @transform_0(%arg0: i32, %arg1: memref<2xi32, #tpu.memory_space<smem>>) -> (i32, i32, i32) {
    %c0_i32 = arith.constant 0 : i32
    %c0_i32_0 = arith.constant 0 : i32
    %c0_i32_1 = arith.constant 0 : i32
    return %arg0, %c0_i32, %c0_i32_0 : i32, i32, i32
  }
  func.func @transform_1(%arg0: i32, %arg1: memref<2xi32, #tpu.memory_space<smem>>) -> (i32, i32) {
    %c0_i32 = arith.constant 0 : i32
    %c0_i32_0 = arith.constant 0 : i32
    %c0_i32_1 = arith.constant 0 : i32
    return %c0_i32, %c0_i32_0 : i32, i32
  }
  func.func @transform_2(%arg0: i32, %arg1: memref<2xi32, #tpu.memory_space<smem>>) -> (i32, i32) {
    %c0_i32 = arith.constant 0 : i32
    %c0_i32_0 = arith.constant 0 : i32
    %c0_i32_1 = arith.constant 0 : i32
    return %c0_i32, %c0_i32_0 : i32, i32
  }
  func.func @transform_3(%arg0: i32, %arg1: memref<2xi32, #tpu.memory_space<smem>>) -> (i32, i32) {
    %c0_i32 = arith.constant 0 : i32
    %c0_i32_0 = arith.constant 0 : i32
    %c0_i32_1 = arith.constant 0 : i32
    return %c0_i32, %c0_i32_0 : i32, i32
  }
  func.func @transform_4(%arg0: i32, %arg1: memref<2xi32, #tpu.memory_space<smem>>) -> (i32, i32) {
    %c0_i32 = arith.constant 0 : i32
    %c0_i32_0 = arith.constant 0 : i32
    %c0_i32_1 = arith.constant 0 : i32
    return %c0_i32, %c0_i32_0 : i32, i32
  }
  func.func @transform_5(%arg0: i32, %arg1: memref<2xi32, #tpu.memory_space<smem>>) -> (i32, i32, i32) {
    %c0_i32 = arith.constant 0 : i32
    %c0_i32_0 = arith.constant 0 : i32
    %c0_i32_1 = arith.constant 0 : i32
    return %arg0, %c0_i32, %c0_i32_0 : i32, i32, i32
  }
}

</mosaic_0001>

<bundles_post_ra>
// kernel: tpu_custom_call.1
= control target key start
LH: loop header
LB: loop body
LE: loop exit
PB: predicated region body
PF: predicated region fallthrough
CT: control target
= control target key end

     0   :  { %s1255_s0 = inlined_call_operand.vmem [shape: s32[2], index: 0, kind: input, shape index: {}]   ;;  %s1256_s1 = inlined_call_operand.vmem [shape: bf16[2,128,32], index: 1, kind: input, shape index: {}]   ;;  %s1257_s2 = inlined_call_operand.vmem [shape: bf16[32,32], index: 2, kind: input, shape index: {}]   ;;  %s1258_s3 = inlined_call_operand.vmem [shape: f32[1,32], index: 3, kind: input, shape index: {}]   ;;  %s1259_s4 = inlined_call_operand.vmem [shape: f32[1,32], index: 4, kind: input, shape index: {}]   ;;  %s1260_s6 = inlined_call_operand.vmem [shape: f32[2,3,128], index: 6, kind: output, shape index: {}]   ;;  %s1261_s5 = inlined_call_operand.<no memory space> [shape: f32[1,1], index: 5, kind: input, shape index: {}]  }
   0x1   :  { %s11_s23 = sshll.u32 %s1255_s0, 4  ;;  %v15_v0 = vstv %s1261_s5  ;;  %s12_s23 = int_to_ptr.vmem [resolvable:$true] %s11_s23 }
   0x2   :  { %16 = vst [vmem:[#allocation4] sm:$0x1] %v15_v0  ;;  %s1078_s26 = scalar_lea.vmem %s12_s23, 16  ;;  %p1083_p1 = scmp.lt.s32.totalorder %s12_s23, %s12_s23 }
   0x3   :  { %p1079_p0 = scmp.ne.s32.totalorder %s12_s23, %s1078_s26  ;;  %p1084_p2 = scmp.lt.s32.totalorder %s1078_s26, %s1078_s26 }
   0x5   :  { %p1085_p3 = por %p1084_p2, %p1083_p1 }
   0x7   :  { %p1086_p4 = pnand %p1085_p3, %p1079_p0 }
   0x9   :  { %1089 = shalt.err (!%p1086_p4)  }
   0xa   :  { %s1100_s27 = smov [#allocation3]  }
   0xb   :  { %14 = dma.vmem_to_smem %s12_s23, 16, %s1100_s27, [#allocation2] }
   0xc   :  { %1094 = dma.done.wait [#allocation2], 16 }
   0xd   :  { %1095 = vsyncadd [#allocation2], 4294967280 }
   0xe   :  { %18 = sfence }
   0xf   :  { %s1146_s28 = smov 0  }
  0x10 LB: > { %s1152_s0 = sadd.s32 4294967295, %s1098_s28   ;;  %p990_p5 = scmp.ge.s32.totalorder %s1098_s28, 1  ;;  %s1098_s28 = sphi %s1146_s28, %s24_s28  }
  0x11   : > { %p196_p6 = scmp.lt.s32.totalorder %s1098_s28, 3 }
  0x13   : > { %p197_p7 = pnand %p990_p5, %p196_p6 }
  0x14   : > { %v1067_v1 = vld [vmem:[%s1257_s2] sm:$0xff] (!%p197_p7)   ;;  %p223_p8 = scmp.lt.s32.totalorder (!%p197_p7), %s1152_s0, 1  ;;  %v1068_v2 = vld [vmem:[%s1257_s2 + $0x8] sm:$0xff] (!%p197_p7)   ;;  %vm312_vm0 = vcmask (!%p197_p7), 261120   ;;  %s1237_s17 = sld [smem:[#allocation3 + %s1152_s0]] (!%p197_p7) }
  0x15   : > { %200 = sbr.rel (%p197_p7) target bundleno = 658 (0x292), region = 40  ;;  %1030 = vmatprep.subr.bf16.mxu0 (!%p197_p7), %v1067_v1  ;;  %1050 = vmatprep.subr.bf16.mxu1 (!%p197_p7), %v1067_v1  ;;  %v1181_v11 = vld [vmem:[%s1258_s3] ss:$0 sm:$0xff] (!%p197_p7) }
  0x16   : > { %1031 = vmatpush3.bf16.msra.mxu0 (!%p197_p7), %v1067_v1  ;;  %1052 = vmatpush3.bf16.msra.mxu1 (!%p197_p7), %v1067_v1  ;;  %v1188_v17 = vld [vmem:[%s1259_s4] ss:$0 sm:$0xff] (!%p197_p7) }
  0x17   : > { %1032 = vmatprep.subr.bf16.mxu0 (!%p197_p7), %v1068_v2  ;;  %1051 = vmatprep.subr.bf16.mxu1 (!%p197_p7), %v1068_v2 }
  0x1a   : > { %1033 = vmatpush3.bf16.msra.mxu0 (!%p197_p7), %v1068_v2  ;;  %1053 = vmatpush3.bf16.msra.mxu1 (!%p197_p7), %v1068_v2  ;;  %p1015_p9 = scmp.eq.s32.totalorder (!%p197_p7), %s1237_s17, 0 }
  0x1c   : > { %s1164_s8 = scalar_select %p223_p8, %s1152_s0, 1 }
  0x1e   : > { %s1019_s9 = sshll.u32 %s1164_s8, 6  ;;  %s993_s18 = sshll.u32 %s1164_s8, 2 }
  0x1f   : > { %s227_s12 = scalar_lea.vmem %s1256_s1, %s1019_s9  ;;  %s1243_s21 = scalar_lea.vmem %s1260_s6, %s993_s18 }
  0x20   : > { %v1069_v3 = vld [vmem:[%s227_s12] sm:$0xff]   ;;  %v1070_v4 = vld [vmem:[%s227_s12 + $0x8] sm:$0xff]   ;;  %v1071_v5 = vld [vmem:[%s227_s12 + $0x10] sm:$0xff]  }
  0x21   : > { %1034 = vmatprep.mubr.msk.bf16.mxu0 %vm312_vm0, %v1069_v3  ;;  %v1073_v6 = vld [vmem:[%s227_s12 + $0x20] sm:$0xff]   ;;  %v1074_v7 = vld [vmem:[%s227_s12 + $0x28] sm:$0xff]   ;;  %v1075_v8 = vld [vmem:[%s227_s12 + $0x30] sm:$0xff]  }
  0x22   : > { %1035 = vmatmul.mubr.msk.bf16.vlgmr.msra.gmra.mrb[0].mxu0 %vm312_vm0, %v1070_v4  ;;  %1042 = vmatprep.mubr.msk.bf16.mxu1 %vm312_vm0, %v1073_v6  ;;  %v1072_v9 = vld [vmem:[%s227_s12 + $0x18] sm:$0xff]  }
  0x23   : > { %1038 = vmatprep.mubr.msk.bf16.mxu0 %vm312_vm0, %v1071_v5  ;;  %1043 = vmatmul.mubr.msk.bf16.vlgmr.msra.gmra.mrb[0].mxu1 %vm312_vm0, %v1074_v7  ;;  %v1076_v10 = vld [vmem:[%s227_s12 + $0x38] sm:$0xff]  }
  0x24   : > { %1046 = vmatprep.mubr.msk.bf16.mxu1 %vm312_vm0, %v1075_v8 }
  0x2a   : > { %1039 = vmatmul.mubr.msk.bf16.gmra.mrb[4].mxu0 %vm312_vm0, %v1072_v9 }
  0x2b   : > { %1047 = vmatmul.mubr.msk.bf16.gmra.mrb[4].mxu1 %vm312_vm0, %v1076_v10 }
  0xf5   : > { %v1036_v12 = vpop.f32.mrb[0].mxu0 }
  0xf6   : > { %v380_v13 = vadd.f32 %v1036_v12, %v1181_v11  ;;  %v371_v14 = vpop.f32.mrb[1].mxu0  ;;  %v1044_v21 = vpop.f32.mrb[0].mxu1 }
  0xf7   : > { %v372_v15 = vadd.f32 %v1181_v11, %v371_v14  ;;  %v1037_v16 = vpop.f32.mrb[2].mxu0  ;;  %v403_v24 = vpop.f32.mrb[1].mxu1  ;;  %v412_v52 = vadd.f32 %v1044_v21, %v1181_v11 }
  0xf8   : > { %v436_v18 = vmax.f32 %v380_v13, 0.0  ;;  %v383_v19 = vadd.f32 %v1037_v16, %v1181_v11  ;;  %v374_v20 = vpop.f32.mrb[3].mxu0  ;;  %v1045_v27 = vpop.f32.mrb[2].mxu1  ;;  %v404_v38 = vadd.f32 %v1181_v11, %v403_v24 }
  0xf9   : > { %v434_v22 = vmax.f32 %v372_v15, 0.0  ;;  %v375_v23 = vadd.f32 %v1181_v11, %v374_v20  ;;  %v406_v30 = vpop.f32.mrb[3].mxu1  ;;  %v415_v61 = vadd.f32 %v1045_v27, %v1181_v11  ;;  %v444_v63 = vmax.f32 %v412_v52, 0.0 }
  0xfa   : > { %v437_v25 = vmax.f32 %v383_v19, 0.0  ;;  %v459_v26 = vmul.f32 %v1188_v17, %v436_v18  ;;  %v407_v49 = vadd.f32 %v1181_v11, %v406_v30  ;;  %v442_v53 = vmax.f32 %v404_v38, 0.0  ;;  %v1014_v30 = vld [vmem:[#allocation4] ss:$0 sm:$0xff] }
  0xfb   : > { %v435_v28 = vmax.f32 %v375_v23, 0.0  ;;  %v457_v29 = vmul.f32 %v1188_v17, %v434_v22  ;;  %v445_v5 = vmax.f32 %v415_v61, 0.0  ;;  %v467_v8 = vmul.f32 %v1188_v17, %v444_v63 }
  0xfc   : > { %v479_v31 = vsel %vm312_vm0, %v459_v26, 0.0  ;;  %v460_v32 = vmul.f32 %v1188_v17, %v437_v25  ;;  %v443_v62 = vmax.f32 %v407_v49, 0.0  ;;  %v465_v0 = vmul.f32 %v1188_v17, %v442_v53 }
  0xfd   : > { %480 = vadd.xlane.f32.xlu1 %v479_v31  ;;  %v1040_v33 = vpop.f32.mrb[4].mxu0  ;;  %v473_v34 = vsel %vm312_vm0, %v457_v29, 0.0  ;;  %v458_v35 = vmul.f32 %v1188_v17, %v435_v28  ;;  %v468_v15 = vmul.f32 %v1188_v17, %v445_v5  ;;  %v503_v19 = vsel %vm312_vm0, %v467_v8, 0.0 }
  0xfe   : > { %v396_v36 = vadd.f32 %v1040_v33, %v1181_v11  ;;  %v387_v37 = vpop.f32.mrb[5].mxu0  ;;  %474 = vadd.xlane.f32.xlu0 %v473_v34  ;;  %v482_v44 = vsel %vm312_vm0, %v460_v32, 0.0  ;;  %v1048_v45 = vpop.f32.mrb[4].mxu1  ;;  %v466_v6 = vmul.f32 %v1188_v17, %v443_v62  ;;  %v497_v10 = vsel %vm312_vm0, %v465_v0, 0.0 }
  0xff   : > { %v388_v39 = vadd.f32 %v1181_v11, %v387_v37  ;;  %v1041_v40 = vpop.f32.mrb[6].mxu0  ;;  %v476_v48 = vsel %vm312_vm0, %v458_v35, 0.0  ;;  %v419_v50 = vpop.f32.mrb[5].mxu1  ;;  %v428_v12 = vadd.f32 %v1048_v45, %v1181_v11  ;;  %v506_v22 = vsel %vm312_vm0, %v468_v15, 0.0 }
 0x100   : > { %v440_v41 = vmax.f32 %v396_v36, 0.0  ;;  %v399_v42 = vadd.f32 %v1041_v40, %v1181_v11  ;;  %v390_v43 = vpop.f32.mrb[7].mxu0  ;;  %v1049_v54 = vpop.f32.mrb[6].mxu1  ;;  %v420_v4 = vadd.f32 %v1181_v11, %v419_v50  ;;  %v500_v14 = vsel %vm312_vm0, %v466_v6, 0.0 }
 0x101   : > { %v438_v46 = vmax.f32 %v388_v39, 0.0  ;;  %v391_v47 = vadd.f32 %v1181_v11, %v390_v43  ;;  %483 = vadd.xlane.f32.xlu1 %v482_v44  ;;  %v422_v58 = vpop.f32.mrb[7].mxu1  ;;  %v431_v16 = vadd.f32 %v1049_v54, %v1181_v11  ;;  %v448_v20 = vmax.f32 %v428_v12, 0.0 }
 0x102   : > { %477 = vadd.xlane.f32.xlu0 %v476_v48  ;;  %v463_v51 = vmul.f32 %v1188_v17, %v440_v41  ;;  %v441_v55 = vmax.f32 %v399_v42, 0.0  ;;  %v423_v7 = vadd.f32 %v1181_v11, %v422_v58  ;;  %v446_v13 = vmax.f32 %v420_v4, 0.0 }
 0x103   : > { %v439_v56 = vmax.f32 %v391_v47, 0.0  ;;  %v461_v57 = vmul.f32 %v1188_v17, %v438_v46  ;;  %v449_v23 = vmax.f32 %v431_v16, 0.0  ;;  %v471_v26 = vmul.f32 %v1188_v17, %v448_v20 }
 0x104   : > { %v491_v59 = vsel %vm312_vm0, %v463_v51, 0.0  ;;  %v464_v3 = vmul.f32 %v1188_v17, %v441_v55  ;;  %v447_v18 = vmax.f32 %v423_v7, 0.0  ;;  %v469_v21 = vmul.f32 %v1188_v17, %v446_v13 }
 0x105   : > { %v462_v60 = vmul.f32 %v1188_v17, %v439_v56  ;;  %v485_v2 = vsel %vm312_vm0, %v461_v57, 0.0  ;;  %v472_v27 = vmul.f32 %v1188_v17, %v449_v23  ;;  %v515_v28 = vsel %vm312_vm0, %v471_v26, 0.0 }
 0x106   : > { %492 = vadd.xlane.f32.xlu0 %v491_v59  ;;  %v494_v9 = vsel %vm312_vm0, %v464_v3, 0.0  ;;  %v470_v24 = vmul.f32 %v1188_v17, %v447_v18  ;;  %v509_v25 = vsel %vm312_vm0, %v469_v21, 0.0  ;;  %v1101_v63 = vmov (!%p1015_p9), 0  }
 0x107   : > { %v488_v1 = vsel %vm312_vm0, %v462_v60, 0.0  ;;  %v518_v29 = vsel %vm312_vm0, %v472_v27, 0.0  ;;  %v582_v0 = vlaneseq (!%p1015_p9) }
 0x108   : > { %489 = vadd.xlane.f32.xlu1 %v488_v1  ;;  %v512_v11 = vsel %vm312_vm0, %v470_v24, 0.0 }
 0x109   : > { %v583_v1 = vshrl.u32 (!%p1015_p9), %v582_v0, 7  ;;  %v600_v3 = vand.u32 (!%p1015_p9), 127, %v582_v0 }
 0x10a   : > { %486 = vadd.xlane.f32.xlu0 %v485_v2 }
 0x10b   : > { %v699_v2 = vsub.s32 (!%p1015_p9), 0, %v583_v1  ;;  %vm717_vm1 = vcmp.lt.s32.totalorder (!%p1015_p9), %v583_v1, %v600_v3 }
 0x10c   : > { %495 = vadd.xlane.f32.xlu1 %v494_v9 }
 0x10e   : > { %498 = vadd.xlane.f32.xlu0 %v497_v10 }
 0x110   : > { %501 = vadd.xlane.f32.xlu1 %v500_v14 }
 0x112   : > { %504 = vadd.xlane.f32.xlu0 %v503_v19 }
 0x114   : > { %507 = vadd.xlane.f32.xlu1 %v506_v22  ;;  %v1102_v22 = vmov (!%p1015_p9), 0.0  }
 0x116   : > { %510 = vadd.xlane.f32.xlu0 %v509_v25 }
 0x118   : > { %513 = vadd.xlane.f32.xlu1 %v512_v11 }
 0x11a   : > { %516 = vadd.xlane.f32.xlu0 %v515_v28 }
 0x11c   : > { %519 = vadd.xlane.f32.xlu1 %v518_v29 }
 0x18a   : > { %v481_v33 = vpop.xlane.xlu1 %480 }
 0x18b   : > { %v475_v31 = vpop.xlane.xlu0 %474  ;;  %v530_v17 = vadd.f32 %v1014_v30, %v481_v33 }
 0x18c   : > { %v528_v32 = vadd.f32 %v1014_v30, %v475_v31 }
 0x18e   : > { %544 = vxpose.xlu0.b32.start [1/16] (narrow) %v528_v32, 8  ;;  %v484_v37 = vpop.xlane.xlu1 %483 }
 0x18f   : > { %v478_v34 = vpop.xlane.xlu0 %477  ;;  %v531_v38 = vadd.f32 %v1014_v30, %v484_v37 }
 0x190   : > { %v529_v35 = vadd.f32 %v1014_v30, %v478_v34 }
 0x192   : > { %545 = vxpose.xlu0.b32.cont [2/16] (narrow) %v529_v35, 8 }
 0x193   : > { %v493_v36 = vpop.xlane.xlu0 %492 }
 0x194   : > { %v534_v43 = vadd.f32 %v1014_v30, %v493_v36 }
 0x195   : > { %v490_v41 = vpop.xlane.xlu1 %489 }
 0x196   : > { %546 = vxpose.xlu0.b32.cont [3/16] (narrow) %v530_v17, 8  ;;  %v533_v42 = vadd.f32 %v1014_v30, %v490_v41 }
 0x197   : > { %v487_v39 = vpop.xlane.xlu0 %486 }
 0x198   : > { %v532_v40 = vadd.f32 %v1014_v30, %v487_v39 }
 0x199   : > { %v496_v44 = vpop.xlane.xlu1 %495 }
 0x19a   : > { %547 = vxpose.xlu0.b32.cont [4/16] (narrow) %v531_v38, 8  ;;  %v535_v45 = vadd.f32 %v1014_v30, %v496_v44 }
 0x19b   : > { %v499_v46 = vpop.xlane.xlu0 %498 }
 0x19c   : > { %v536_v47 = vadd.f32 %v1014_v30, %v499_v46 }
 0x19d   : > { %v502_v48 = vpop.xlane.xlu1 %501 }
 0x19e   : > { %548 = vxpose.xlu0.b32.cont [5/16] (narrow) %v532_v40, 8  ;;  %v537_v49 = vadd.f32 %v1014_v30, %v502_v48 }
 0x19f   : > { %v505_v50 = vpop.xlane.xlu0 %504 }
 0x1a0   : > { %v538_v51 = vadd.f32 %v1014_v30, %v505_v50 }
 0x1a1   : > { %v508_v52 = vpop.xlane.xlu1 %507 }
 0x1a2   : > { %549 = vxpose.xlu0.b32.cont [6/16] (narrow) %v533_v42, 8  ;;  %v539_v53 = vadd.f32 %v1014_v30, %v508_v52 }
 0x1a3   : > { %v511_v54 = vpop.xlane.xlu0 %510 }
 0x1a4   : > { %v540_v55 = vadd.f32 %v1014_v30, %v511_v54 }
 0x1a5   : > { %v514_v56 = vpop.xlane.xlu1 %513 }
 0x1a6   : > { %550 = vxpose.xlu0.b32.cont [7/16] (narrow) %v534_v43, 8  ;;  %v541_v57 = vadd.f32 %v1014_v30, %v514_v56 }
 0x1a7   : > { %v517_v58 = vpop.xlane.xlu0 %516 }
 0x1a8   : > { %v542_v59 = vadd.f32 %v1014_v30, %v517_v58 }
 0x1a9   : > { %v520_v60 = vpop.xlane.xlu1 %519 }
 0x1aa   : > { %551 = vxpose.xlu0.b32.cont [8/16] (narrow) %v535_v45, 8  ;;  %v543_v61 = vadd.f32 %v1014_v30, %v520_v60 }
 0x1ae   : > { %552 = vxpose.xlu0.b32.cont [9/16] (narrow) %v536_v47, 8 }
 0x1b2   : > { %553 = vxpose.xlu0.b32.cont [10/16] (narrow) %v537_v49, 8 }
 0x1b6   : > { %554 = vxpose.xlu0.b32.cont [11/16] (narrow) %v538_v51, 8 }
 0x1ba   : > { %555 = vxpose.xlu0.b32.cont [12/16] (narrow) %v539_v53, 8 }
 0x1be   : > { %556 = vxpose.xlu0.b32.cont [13/16] (narrow) %v540_v55, 8 }
 0x1c2   : > { %557 = vxpose.xlu0.b32.cont [14/16] (narrow) %v541_v57, 8 }
 0x1c6   : > { %558 = vxpose.xlu0.b32.cont [15/16] (narrow) %v542_v59, 8 }
 0x1ca   : > { %559 = vxpose.xlu0.b32.end [16/16] (narrow) %v543_v61, 8 }
 0x1f3   : > { %1077 = vset.pattern.permute.xlu0 (!%p1015_p9), %v1101_v63 }
 0x1f4   : > { %619 = vperm.xlu0 (!%p1015_p9), %1077, %v528_v32  }
 0x209   : > { %581 = sbr.rel (%p1015_p9) target bundleno = 649 (0x289), region = 44 }
 0x20e   : > { %v560_v62 = vpop.trf.xlu0 }
 0x20f   : > { %576 = vst [vmem:[%s1243_s21] sm:$0x1] %v560_v62  ;;  %v700_v4 = vrot.slane (!%p1015_p9), %v560_v62, %v699_v2 }
 0x273   : > { %v620_v5 = vpop.permute.xlu0 %619 }
 0x274   : > { %vm701_vm2 = vcmp.eq.f32.partialorder %v620_v5, %v700_v4  ;;  %vm749_vm3 = vcmp.gt.f32.partialorder %v620_v5, %v700_v4  ;;  %vm836_vm4 = vcmp.lt.f32.partialorder %v620_v5, %v700_v4 }
 0x275   : > { %vm733_vm5 = vmand %vm701_vm2, %vm717_vm1 }
 0x276   : > { %vm765_vm6 = vmor %vm749_vm3, %vm733_vm5 }
 0x277   : > { %v797_v6 = vsel %vm765_vm6, 1, %v1101_v63  ;;  %vm852_vm7 = vmor %vm836_vm4, %vm733_vm5 }
 0x278   : > { %v828_v7 = vrot.slane %v797_v6, 4  ;;  %v884_v8 = vsel %vm852_vm7, 1, %v1101_v63 }
 0x279   : > { %v915_v9 = vrot.slane %v884_v8, 4 }
 0x27a   : > { %v829_v10 = vadd.s32 %v828_v7, %v797_v6 }
 0x27b   : > { %v916_v12 = vadd.s32 %v915_v9, %v884_v8 }
 0x27c   : > { %v830_v13 = vrot.slane %v829_v10, 2 }
 0x27d   : > { %v917_v14 = vrot.slane %v916_v12, 2 }
 0x27e   : > { %v831_v15 = vadd.s32 %v830_v13, %v829_v10 }
 0x27f   : > { %v918_v16 = vadd.s32 %v917_v14, %v916_v12 }
 0x280   : > { %v832_v18 = vrot.slane %v831_v15, 1 }
 0x281   : > { %v919_v19 = vrot.slane %v918_v16, 1 }
 0x282   : > { %v833_v20 = vadd.s32 %v832_v18, %v831_v15 }
 0x283   : > { %v920_v21 = vadd.s32 %v919_v19, %v918_v16 }
 0x284   : > { %vm834_vm8 = vcmp.lt.s32.totalorder %v833_v20, 4 }
 0x285   : > { %v835_v23 = vsel %vm834_vm8, 1.0, %v1102_v22  ;;  %vm921_vm9 = vcmp.lt.s32.totalorder %v920_v21, 2 }
 0x286   : > { %v922_v24 = vsel %vm921_vm9, 0.0, %v835_v23  ;;  %vm923_vm10 = vmor %vm834_vm8, %vm921_vm9 }
 0x287   : > { %v924_v25 = vsel %vm923_vm10, 1.0, %v1102_v22  ;;  %925 = vst [vmem:[%s1243_s21 + $0x1] sm:$0x1] %v922_v24 }
 0x288   : > { %926 = vst [vmem:[%s1243_s21 + $0x2] sm:$0x1] %v924_v25 }
 0x289 PF: > { %p1016_p10 = scmp.ne.s32.totalorder %s1237_s17, 0 }
 0x28a   : > { %v1103_v26 = vmov (!%p1016_p10), 0.0   ;;  %v1104_v11 = vmov (!%p1016_p10), 1.0  }
 0x28b   : > { %930 = sbr.rel (%p1016_p10) target bundleno = 658 (0x292), region = 48  ;;  %931 = vst [vmem:[%s1243_s21 + $0x1] sm:$0x1] (!%p1016_p10), %v1103_v26  ;;  %932 = vst [vmem:[%s1243_s21 + $0x2] sm:$0x1] (!%p1016_p10), %v1104_v11 }
 0x292 PF: > { %s24_s28 = sadd.s32 1, %s1098_s28  }
 0x293   : > { %p21_p11 = scmp.ge.s32.totalorder %s24_s28, 4  }
 0x295   :  { %23 = sbr.rel (!%p21_p11) target bundleno = 16 (0x10), region = 78 }

</bundles_post_ra>
